<compile_context>
chip_gen: v6e
topology: v6e:2x2x1
jax: 0.10.0
libtpu: 0.0.40
codegen_flags: <defaults>
</compile_context>

<pallas_src>
import functools
import itertools

import numpy as np
import jax
import jax.numpy as jnp
from jax.experimental import pallas as pl
from jax.experimental.pallas import tpu as pltpu

_INV_SQRT2 = 0.7071067811865476
_LN_EPS = 1e-5
_BN_EPS = 1e-5


# ---------------------------------------------------------------------------
# Pallas kernels
# ---------------------------------------------------------------------------
def _ln_linear_kernel(x_ref, g_ref, b_ref, w_ref, bias_ref, o_ref, *, eps, act_gelu):
    """LayerNorm(x) @ W + bias [+ exact GELU].  W is bf16-resident."""
    x = x_ref[...].astype(jnp.float32)                       # (TM, K)
    mu = jnp.mean(x, axis=-1, keepdims=True)
    xc = x - mu
    var = jnp.mean(xc * xc, axis=-1, keepdims=True)
    y = xc * jax.lax.rsqrt(var + eps) * g_ref[...] + b_ref[...]
    acc = jnp.dot(y.astype(jnp.bfloat16), w_ref[...],
                  preferred_element_type=jnp.float32)
    acc = acc + bias_ref[...]
    if act_gelu:
        acc = 0.5 * acc * (1.0 + jax.lax.erf(acc * _INV_SQRT2))
    o_ref[...] = acc.astype(o_ref.dtype)


def _linear_kernel(x_ref, w_ref, bias_ref, *rest, has_residual):
    """x @ W + bias [+ residual].  W is bf16-resident."""
    if has_residual:
        res_ref, o_ref = rest
    else:
        (o_ref,) = rest
    acc = jnp.dot(x_ref[...].astype(jnp.bfloat16), w_ref[...],
                  preferred_element_type=jnp.float32)
    acc = acc + bias_ref[...]
    if has_residual:
        acc = acc + res_ref[...].astype(jnp.float32)
    o_ref[...] = acc.astype(o_ref.dtype)


def _attn_core_kernel(q_ref, k_ref, v_ref, bias_ref, o_ref, *, scale):
    """softmax(q k^T * scale + bias) @ v for one head / one tile of windows."""
    q = q_ref[...][0].astype(jnp.bfloat16)                   # (T, N, kd)
    k = k_ref[...][0].astype(jnp.bfloat16)
    v = v_ref[...][0].astype(jnp.bfloat16)
    s = jnp.einsum("bnd,bmd->bnm", q, k,
                   preferred_element_type=jnp.float32) * scale
    s = s + bias_ref[...]                                    # (1, N, N) broadcast
    s = s - jnp.max(s, axis=-1, keepdims=True)
    p = jnp.exp(s)
    p = p / jnp.sum(p, axis=-1, keepdims=True)
    o = jnp.einsum("bnm,bmd->bnd", p.astype(jnp.bfloat16), v,
                   preferred_element_type=jnp.float32)
    o_ref[...] = o[None].astype(o_ref.dtype)


def _dwconv_bn_kernel(a_ref, r_ref, w_ref, b_ref, o_ref, *, H, W):
    """(attn + residual) -> depthwise 3x3 conv (BN scale pre-folded) + bias."""
    x = a_ref[...][0].astype(jnp.float32) + r_ref[...][0].astype(jnp.float32)
    w = w_ref[...]                                           # (3, 3, C)
    C = x.shape[-1]
    acc = jnp.zeros((H, W, C), jnp.float32)
    for ky in range(3):
        for kx in range(3):
            acc = acc + x[ky:ky + H, kx:kx + W, :] * w[ky, kx]
    acc = acc + b_ref[...]
    o_ref[...] = acc[None].astype(o_ref.dtype)


# ---------------------------------------------------------------------------
# Pallas-call wrappers
# ---------------------------------------------------------------------------
def _pad_rows(a, mult):
    pad = (-a.shape[0]) % mult
    if pad:
        a = jnp.pad(a, ((0, pad),) + ((0, 0),) * (a.ndim - 1))
    return a


def linear_pallas(x, w_bf16, bias, *, ln_params=None, act_gelu=False,
                  residual=None, eps=_LN_EPS, tile_m=256):
    """y = [LN(x)] @ W + b [+ GELU] [+ residual], row-tiled over M."""
    M, K = x.shape
    Dout = w_bf16.shape[1]
    tm = min(tile_m, M + ((-M) % 8))          # multiple of 8 (or == padded M)
    xp = _pad_rows(x.astype(jnp.float32), tm)
    Mp = xp.shape[0]
    bias2 = bias.reshape(1, Dout).astype(jnp.float32)

    tile_spec = pl.BlockSpec((tm, K), lambda i: (i, 0))
    out_spec = pl.BlockSpec((tm, Dout), lambda i: (i, 0))

    if ln_params is not None:
        g2 = ln_params[0].reshape(1, K).astype(jnp.float32)
        b2 = ln_params[1].reshape(1, K).astype(jnp.float32)
        kernel = functools.partial(_ln_linear_kernel, eps=eps, act_gelu=act_gelu)
        args = (xp, g2, b2, w_bf16, bias2)
        in_specs = [tile_spec,
                    pl.BlockSpec((1, K), lambda i: (0, 0)),
                    pl.BlockSpec((1, K), lambda i: (0, 0)),
                    pl.BlockSpec((K, Dout), lambda i: (0, 0)),
                    pl.BlockSpec((1, Dout), lambda i: (0, 0))]
    else:
        has_res = residual is not None
        kernel = functools.partial(_linear_kernel, has_residual=has_res)
        args = (xp, w_bf16, bias2)
        in_specs = [tile_spec,
                    pl.BlockSpec((K, Dout), lambda i: (0, 0)),
                    pl.BlockSpec((1, Dout), lambda i: (0, 0))]
        if has_res:
            args = args + (_pad_rows(residual.astype(jnp.float32), tm),)
            in_specs.append(pl.BlockSpec((tm, Dout), lambda i: (i, 0)))

    out = pl.pallas_call(
        kernel,
        out_shape=jax.ShapeDtypeStruct((Mp, Dout), jnp.float32),
        grid=(Mp // tm,),
        in_specs=in_specs,
        out_specs=out_spec,
        compiler_params=pltpu.CompilerParams(dimension_semantics=("parallel",)),
    )(*args)
    return out[:M]


def window_attention_pallas(q, k, v, ab, scale, *, tile_w=8):
    """q, k: (NH, BW, N, kd); v: (NH, BW, N, d); ab: (NH, N, N)."""
    NH, BW, N, kd = q.shape
    d = v.shape[-1]
    tw = min(tile_w, BW)
    pad = (-BW) % tw
    if pad:
        pads = ((0, 0), (0, pad), (0, 0), (0, 0))
        q, k, v = jnp.pad(q, pads), jnp.pad(k, pads), jnp.pad(v, pads)
    BWp = BW + pad

    kernel = functools.partial(_attn_core_kernel, scale=scale)
    out = pl.pallas_call(
        kernel,
        out_shape=jax.ShapeDtypeStruct((NH, BWp, N, d), jnp.float32),
        grid=(NH, BWp // tw),
        in_specs=[
            pl.BlockSpec((1, tw, N, kd), lambda h, i: (h, i, 0, 0)),
            pl.BlockSpec((1, tw, N, kd), lambda h, i: (h, i, 0, 0)),
            pl.BlockSpec((1, tw, N, d), lambda h, i: (h, i, 0, 0)),
            pl.BlockSpec((1, N, N), lambda h, i: (h, 0, 0)),
        ],
        out_specs=pl.BlockSpec((1, tw, N, d), lambda h, i: (h, i, 0, 0)),
        compiler_params=pltpu.CompilerParams(
            dimension_semantics=("parallel", "parallel")),
    )(q, k, v, ab.astype(jnp.float32))
    return out[:, :BW]


def dwconv_bn_pallas(attn_nhwc, res_nhwc, w_eff, b_eff):
    """Depthwise 3x3, stride 1, pad 1 conv + folded BN; residual add fused."""
    B, H, W, C = attn_nhwc.shape
    halo = ((0, 0), (1, 1), (1, 1), (0, 0))
    ap = jnp.pad(attn_nhwc.astype(jnp.float32), halo)
    rp = jnp.pad(res_nhwc.astype(jnp.float32), halo)
    kernel = functools.partial(_dwconv_bn_kernel, H=H, W=W)
    return pl.pallas_call(
        kernel,
        out_shape=jax.ShapeDtypeStruct((B, H, W, C), jnp.float32),
        grid=(B,),
        in_specs=[
            pl.BlockSpec((1, H + 2, W + 2, C), lambda b: (b, 0, 0, 0)),
            pl.BlockSpec((1, H + 2, W + 2, C), lambda b: (b, 0, 0, 0)),
            pl.BlockSpec((3, 3, C), lambda b: (0, 0, 0)),
            pl.BlockSpec((1, C), lambda b: (0, 0)),
        ],
        out_specs=pl.BlockSpec((1, H, W, C), lambda b: (b, 0, 0, 0)),
        compiler_params=pltpu.CompilerParams(dimension_semantics=("parallel",)),
    )(ap, rp, w_eff.astype(jnp.float32), b_eff.reshape(1, C).astype(jnp.float32))


# ---------------------------------------------------------------------------
# Layout glue (window partition / reverse), shared by kernel path & reference
# ---------------------------------------------------------------------------
def _window_partition(x, H, W, ws):
    B, L, C = x.shape
    xh = x.reshape(B, H, W, C)
    pad_b = (ws - H % ws) % ws
    pad_r = (ws - W % ws) % ws
    if pad_b or pad_r:
        xh = jnp.pad(xh, ((0, 0), (0, pad_b), (0, pad_r), (0, 0)))
    pH, pW = H + pad_b, W + pad_r
    nH, nW = pH // ws, pW // ws
    xw = xh.reshape(B, nH, ws, nW, ws, C).transpose(0, 1, 3, 2, 4, 5)
    return xw.reshape(B * nH * nW, ws * ws, C), (pH, pW, nH, nW, pad_b, pad_r)


def _window_reverse(xw, B, H, W, C, ws, meta):
    pH, pW, nH, nW, pad_b, pad_r = meta
    x = xw.reshape(B, nH, nW, ws, ws, C).transpose(0, 1, 3, 2, 4, 5)
    x = x.reshape(B, pH, pW, C)
    if pad_b or pad_r:
        x = x[:, :H, :W]
    return x


# ---------------------------------------------------------------------------
# Parameters (deterministic synthetic, mirroring the PyTorch module shapes)
# ---------------------------------------------------------------------------
def _attention_bias_index(window_size):
    points = list(itertools.product(range(window_size), range(window_size)))
    offsets, idxs = {}, []
    for p1 in points:
        for p2 in points:
            off = (abs(p1[0] - p2[0]), abs(p1[1] - p2[1]))
            if off not in offsets:
                offsets[off] = len(offsets)
            idxs.append(offsets[off])
    n = len(points)
    return np.asarray(idxs, np.int32).reshape(n, n), len(offsets)


def _fold_bn(conv_w, gamma, beta, mean, var, eps=_BN_EPS):
    scale = gamma / jnp.sqrt(var + eps)
    w_eff = jnp.transpose(conv_w[:, 0], (1, 2, 0)) * scale     # (3, 3, C)
    b_eff = beta - mean * scale
    return w_eff.astype(jnp.float32), b_eff.astype(jnp.float32)


def init_block_params(key, dim, num_heads, window_size, mlp_ratio):
    head_dim = dim // num_heads
    kd = head_dim                 # key_dim
    d = head_dim                  # attn_ratio = 1 in TinyViTBlock
    h = num_heads * (2 * kd + d)
    dh = num_heads * d
    hidden = int(dim * mlp_ratio)
    ks = jax.random.split(key, 18)
    s = 0.05
    idxs, n_off = _attention_bias_index(window_size)
    attn_biases = 0.1 * jax.random.normal(ks[0], (num_heads, n_off), jnp.float32)

    conv_w = s * jax.random.normal(ks[1], (dim, 1, 3, 3), jnp.float32)
    bn_g = 1.0 + 0.1 * jax.random.normal(ks[2], (dim,), jnp.float32)
    bn_b = 0.1 * jax.random.normal(ks[3], (dim,), jnp.float32)
    bn_mean = 0.1 * jax.random.normal(ks[4], (dim,), jnp.float32)
    bn_var = 0.5 + jax.random.uniform(ks[5], (dim,), jnp.float32)
    conv_w_eff, conv_b_eff = _fold_bn(conv_w, bn_g, bn_b, bn_mean, bn_var)

    return dict(
        num_heads=num_heads, key_dim=kd, d=d, scale=float(kd) ** -0.5,
        # attention
        norm_g=1.0 + 0.1 * jax.random.normal(ks[6], (dim,), jnp.float32),
        norm_b=0.1 * jax.random.normal(ks[7], (dim,), jnp.float32),
        qkv_w=(s * jax.random.normal(ks[8], (dim, h), jnp.float32)).astype(jnp.bfloat16),
        qkv_b=s * jax.random.normal(ks[9], (h,), jnp.float32),
        proj_w=(s * jax.random.normal(ks[10], (dh, dim), jnp.float32)).astype(jnp.bfloat16),
        proj_b=s * jax.random.normal(ks[11], (dim,), jnp.float32),
        ab=attn_biases[:, idxs],                         # (NH, N, N) eval-mode bias
        # local depthwise Conv2d_BN (raw + folded)
        conv_w=conv_w, bn_g=bn_g, bn_b=bn_b, bn_mean=bn_mean, bn_var=bn_var,
        conv_w_eff=conv_w_eff, conv_b_eff=conv_b_eff,
        # MLP
        mlp_norm_g=1.0 + 0.1 * jax.random.normal(ks[12], (dim,), jnp.float32),
        mlp_norm_b=0.1 * jax.random.normal(ks[13], (dim,), jnp.float32),
        fc1_w=(s * jax.random.normal(ks[14], (dim, hidden), jnp.float32)).astype(jnp.bfloat16),
        fc1_b=s * jax.random.normal(ks[15], (hidden,), jnp.float32),
        fc2_w=(s * jax.random.normal(ks[16], (hidden, dim), jnp.float32)).astype(jnp.bfloat16),
        fc2_b=s * jax.random.normal(ks[17], (dim,), jnp.float32),
    )


def init_basic_layer_params(key, dim, depth, num_heads, window_size, mlp_ratio):
    return [init_block_params(k, dim, num_heads, window_size, mlp_ratio)
            for k in jax.random.split(key, depth)]


# ---------------------------------------------------------------------------
# Forward pass (Pallas path)
# ---------------------------------------------------------------------------
def tinyvit_block_forward(p, x, hw_size, window_size):
    B, L, C = x.shape
    H, W = hw_size
    assert L == H * W, "input feature has wrong size"
    res = x
    ws = window_size
    NH, kd, d = p["num_heads"], p["key_dim"], p["d"]

    # window partition (layout glue)
    xw, meta = _window_partition(x, H, W, ws)
    BW, N, _ = xw.shape

    # attention: fused LN + qkv projection
    qkv = linear_pallas(xw.reshape(BW * N, C), p["qkv_w"], p["qkv_b"],
                        ln_params=(p["norm_g"], p["norm_b"]))
    qkv = qkv.reshape(BW, N, NH, 2 * kd + d)
    q = jnp.transpose(qkv[..., :kd], (2, 0, 1, 3))           # (NH, BW, N, kd)
    k = jnp.transpose(qkv[..., kd:2 * kd], (2, 0, 1, 3))
    v = jnp.transpose(qkv[..., 2 * kd:], (2, 0, 1, 3))       # (NH, BW, N, d)

    # attention core
    o = window_attention_pallas(q, k, v, p["ab"], p["scale"])  # (NH, BW, N, d)
    o = jnp.transpose(o, (1, 2, 0, 3)).reshape(BW * N, NH * d)

    # output projection
    attn_out = linear_pallas(o, p["proj_w"], p["proj_b"]).reshape(BW, N, C)
    # TODO(synk): get_attention=True path (returning/averaging attention maps)
    # is not emitted — BasicLayer.forward only propagates x.

    # window reverse, then residual-add + depthwise Conv2d_BN (fused kernel)
    attn_nhwc = _window_reverse(attn_out, B, H, W, C, ws, meta)
    x2 = dwconv_bn_pallas(attn_nhwc, res.reshape(B, H, W, C),
                          p["conv_w_eff"], p["conv_b_eff"]).reshape(B, L, C)

    # MLP: fused LN + fc1 + GELU, then fc2 + residual (Dropout/DropPath are
    # identity at the default drop=0.0 / drop_path=0.0).
    hmid = linear_pallas(x2.reshape(B * L, C), p["fc1_w"], p["fc1_b"],
                         ln_params=(p["mlp_norm_g"], p["mlp_norm_b"]),
                         act_gelu=True)
    out = linear_pallas(hmid, p["fc2_w"], p["fc2_b"],
                        residual=x2.reshape(B * L, C))
    return out.reshape(B, L, C)


def basic_layer_forward(params, x, out_size, window_size):
    """BasicLayer.forward: `depth` TinyViTBlocks; returns (x, out_size)."""
    for p in params:
        x = tinyvit_block_forward(p, x, out_size, window_size)
    # TODO(synk): downsample (PatchMerging) not implemented — BasicLayer
    # defaults to downsample=None and the class is not part of this spec.
    return x, out_size


# ---------------------------------------------------------------------------
# Pure-JAX reference (mirrors the PyTorch math; bf16 matmul operands like kernel)
# ---------------------------------------------------------------------------
def _ref_layernorm(x, g, b, eps=_LN_EPS):
    mu = jnp.mean(x, axis=-1, keepdims=True)
    xc = x - mu
    var = jnp.mean(xc * xc, axis=-1, keepdims=True)
    return xc * jax.lax.rsqrt(var + eps) * g + b


def _ref_linear(x, w_bf16, b):
    return jnp.dot(x.astype(jnp.bfloat16), w_bf16,
                   preferred_element_type=jnp.float32) + b


def _ref_gelu(x):
    return 0.5 * x * (1.0 + jax.lax.erf(x * _INV_SQRT2))


def tinyvit_block_reference(p, x, hw_size, window_size):
    B, L, C = x.shape
    H, W = hw_size
    res = x
    ws = window_size
    NH, kd, d = p["num_heads"], p["key_dim"], p["d"]

    xw, meta = _window_partition(x, H, W, ws)
    BW, N, _ = xw.shape

    xn = _ref_layernorm(xw, p["norm_g"], p["norm_b"])
    qkv = _ref_linear(xn, p["qkv_w"], p["qkv_b"]).reshape(BW, N, NH, 2 * kd + d)
    q = jnp.transpose(qkv[..., :kd], (0, 2, 1, 3))
    k = jnp.transpose(qkv[..., kd:2 * kd], (0, 2, 1, 3))
    v = jnp.transpose(qkv[..., 2 * kd:], (0, 2, 1, 3))
    attn = jnp.einsum("bhnd,bhmd->bhnm", q.astype(jnp.bfloat16),
                      k.astype(jnp.bfloat16),
                      preferred_element_type=jnp.float32) * p["scale"]
    attn = jax.nn.softmax(attn + p["ab"][None], axis=-1)
    o = jnp.einsum("bhnm,bhmd->bhnd", attn.astype(jnp.bfloat16),
                   v.astype(jnp.bfloat16), preferred_element_type=jnp.float32)
    o = jnp.transpose(o, (0, 2, 1, 3)).reshape(BW, N, NH * d)
    o = _ref_linear(o, p["proj_w"], p["proj_b"])

    attn_nhwc = _window_reverse(o.reshape(BW, N, C), B, H, W, C, ws, meta)
    x1 = res.reshape(B, H, W, C) + attn_nhwc

    w_hwio = jnp.transpose(p["conv_w"], (2, 3, 1, 0))          # (3, 3, 1, C)
    y = jax.lax.conv_general_dilated(
        x1, w_hwio, window_strides=(1, 1), padding=((1, 1), (1, 1)),
        dimension_numbers=("NHWC", "HWIO", "NHWC"), feature_group_count=C)
    scale_bn = p["bn_g"] / jnp.sqrt(p["bn_var"] + _BN_EPS)
    y = y * scale_bn + (p["bn_b"] - p["bn_mean"] * scale_bn)
    x2 = y.reshape(B, L, C)

    hn = _ref_layernorm(x2, p["mlp_norm_g"], p["mlp_norm_b"])
    hmid = _ref_gelu(_ref_linear(hn, p["fc1_w"], p["fc1_b"]))
    return x2 + _ref_linear(hmid, p["fc2_w"], p["fc2_b"])


def basic_layer_reference(params, x, out_size, window_size):
    for p in params:
        x = tinyvit_block_reference(p, x, out_size, window_size)
    return x


# ---------------------------------------------------------------------------
if __name__ == "__main__":
    key = jax.random.PRNGKey(0)
    kx, kp = jax.random.split(key)

    B = 2
    dim = 32
    num_heads = 2
    window_size = 4
    mlp_ratio = 4.0
    depth = 2
    H = W = 8
    L = H * W

    x = jax.random.normal(kx, (B, L, dim), jnp.float32)
    params = init_basic_layer_params(kp, dim=dim, depth=depth,
                                     num_heads=num_heads,
                                     window_size=window_size,
                                     mlp_ratio=mlp_ratio)

    out, out_size = basic_layer_forward(params, x, (H, W), window_size)
    out = jax.block_until_ready(out)
    assert out.shape == (B, L, dim), out.shape
    assert out_size == (H, W)

    ref = jax.block_until_ready(
        basic_layer_reference(params, x, (H, W), window_size))
    max_err = float(jnp.max(jnp.abs(out - ref)))
    assert max_err < 1e-2, f"mismatch vs reference: {max_err}"

    print("KERNEL_OK")
</pallas_src>

<mosaic_0001>
module attributes {stable_mosaic.version = 11 : i64} {
  func.func @_ln_linear_kernel(%arg0: i32, %arg1: memref<128x32xf32, #tpu.memory_space<vmem>>, %arg2: memref<1x32xf32, #tpu.memory_space<vmem>>, %arg3: memref<1x32xf32, #tpu.memory_space<vmem>>, %arg4: memref<32x96xbf16, #tpu.memory_space<vmem>>, %arg5: memref<1x96xf32, #tpu.memory_space<vmem>>, %arg6: memref<128x96xf32, #tpu.memory_space<vmem>>) attributes {dimension_semantics = [#tpu.dimension_semantics<parallel>], iteration_bounds = array<i64: 1>, scalar_prefetch = 0 : i64, scratch_operands = 0 : i64, tpu.core_type = #tpu.core_type<tc>, window_params = [{transform_indices = @transform_0, window_bounds = array<i64: 128, 32>}, {pipeline_mode = #tpu.pipeline_mode<synchronous>, transform_indices = @transform_1, window_bounds = array<i64: 1, 32>}, {pipeline_mode = #tpu.pipeline_mode<synchronous>, transform_indices = @transform_2, window_bounds = array<i64: 1, 32>}, {pipeline_mode = #tpu.pipeline_mode<synchronous>, transform_indices = @transform_3, window_bounds = array<i64: 32, 96>}, {pipeline_mode = #tpu.pipeline_mode<synchronous>, transform_indices = @transform_4, window_bounds = array<i64: 1, 96>}, {transform_indices = @transform_5, window_bounds = array<i64: 128, 96>}]} {
    %c0 = arith.constant 0 : index
    %c0_0 = arith.constant 0 : index
    %0 = vector.load %arg1[%c0, %c0_0] : memref<128x32xf32, #tpu.memory_space<vmem>>, vector<128x32xf32>
    %cst = arith.constant dense<0.000000e+00> : vector<128xf32>
    %1 = vector.multi_reduction <add>, %0, %cst [1] : vector<128x32xf32> to vector<128xf32>
    %2 = vector.shape_cast %1 : vector<128xf32> to vector<128x1xf32>
    %cst_1 = arith.constant 3.200000e+01 : f32
    %3 = vector.broadcast %cst_1 : f32 to vector<128x1xf32>
    %4 = arith.divf %2, %3 : vector<128x1xf32>
    %5 = vector.broadcast %4 : vector<128x1xf32> to vector<128x32xf32>
    %6 = arith.subf %0, %5 : vector<128x32xf32>
    %7 = arith.mulf %6, %6 : vector<128x32xf32>
    %cst_2 = arith.constant dense<0.000000e+00> : vector<128xf32>
    %8 = vector.multi_reduction <add>, %7, %cst_2 [1] : vector<128x32xf32> to vector<128xf32>
    %9 = vector.shape_cast %8 : vector<128xf32> to vector<128x1xf32>
    %cst_3 = arith.constant 3.200000e+01 : f32
    %10 = vector.broadcast %cst_3 : f32 to vector<128x1xf32>
    %11 = arith.divf %9, %10 : vector<128x1xf32>
    %cst_4 = arith.constant 9.99999974E-6 : f32
    %12 = vector.broadcast %cst_4 : f32 to vector<128x1xf32>
    %13 = arith.addf %11, %12 : vector<128x1xf32>
    %14 = math.rsqrt %13 : vector<128x1xf32>
    %15 = vector.broadcast %14 : vector<128x1xf32> to vector<128x32xf32>
    %16 = arith.mulf %6, %15 : vector<128x32xf32>
    %c0_5 = arith.constant 0 : index
    %c0_6 = arith.constant 0 : index
    %17 = vector.load %arg2[%c0_5, %c0_6] : memref<1x32xf32, #tpu.memory_space<vmem>>, vector<1x32xf32>
    %18 = vector.broadcast %17 : vector<1x32xf32> to vector<128x32xf32>
    %19 = arith.mulf %16, %18 : vector<128x32xf32>
    %c0_7 = arith.constant 0 : index
    %c0_8 = arith.constant 0 : index
    %20 = vector.load %arg3[%c0_7, %c0_8] : memref<1x32xf32, #tpu.memory_space<vmem>>, vector<1x32xf32>
    %21 = vector.broadcast %20 : vector<1x32xf32> to vector<128x32xf32>
    %22 = arith.addf %19, %21 : vector<128x32xf32>
    %23 = arith.truncf %22 : vector<128x32xf32> to vector<128x32xbf16>
    %c0_9 = arith.constant 0 : index
    %c0_10 = arith.constant 0 : index
    %24 = vector.load %arg4[%c0_9, %c0_10] : memref<32x96xbf16, #tpu.memory_space<vmem>>, vector<32x96xbf16>
    %cst_11 = arith.constant dense<0.000000e+00> : vector<128x96xf32>
    %25 = tpu.matmul %23, %24, %cst_11 {dimension_numbers = #tpu.dot_dimension_numbers<[1], [0], [0], [1], [0, 0, 1, 1], [], []>} : vector<128x32xbf16>, vector<32x96xbf16>, vector<128x96xf32> -> vector<128x96xf32>
    %c0_12 = arith.constant 0 : index
    %c0_13 = arith.constant 0 : index
    %26 = vector.load %arg5[%c0_12, %c0_13] : memref<1x96xf32, #tpu.memory_space<vmem>>, vector<1x96xf32>
    %27 = vector.broadcast %26 : vector<1x96xf32> to vector<128x96xf32>
    %28 = arith.addf %25, %27 : vector<128x96xf32>
    %c0_14 = arith.constant 0 : index
    %c0_15 = arith.constant 0 : index
    %29 = vector.load %arg6[%c0_14, %c0_15] : memref<128x96xf32, #tpu.memory_space<vmem>>, vector<128x96xf32>
    tpu.vector_store %arg6[%c0_14, %c0_15], %28 {strides = array<i32>} : memref<128x96xf32, #tpu.memory_space<vmem>>, vector<128x96xf32>,
    return
  }
  func.func @transform_0(%arg0: i32) -> (i32, i32) {
    %c0_i32 = arith.constant 0 : i32
    %c0_i32_0 = arith.constant 0 : i32
    return %arg0, %c0_i32 : i32, i32
  }
  func.func @transform_1(%arg0: i32) -> (i32, i32) {
    %c0_i32 = arith.constant 0 : i32
    %c0_i32_0 = arith.constant 0 : i32
    %c0_i32_1 = arith.constant 0 : i32
    return %c0_i32, %c0_i32_0 : i32, i32
  }
  func.func @transform_2(%arg0: i32) -> (i32, i32) {
    %c0_i32 = arith.constant 0 : i32
    %c0_i32_0 = arith.constant 0 : i32
    %c0_i32_1 = arith.constant 0 : i32
    return %c0_i32, %c0_i32_0 : i32, i32
  }
  func.func @transform_3(%arg0: i32) -> (i32, i32) {
    %c0_i32 = arith.constant 0 : i32
    %c0_i32_0 = arith.constant 0 : i32
    %c0_i32_1 = arith.constant 0 : i32
    return %c0_i32, %c0_i32_0 : i32, i32
  }
  func.func @transform_4(%arg0: i32) -> (i32, i32) {
    %c0_i32 = arith.constant 0 : i32
    %c0_i32_0 = arith.constant 0 : i32
    %c0_i32_1 = arith.constant 0 : i32
    return %c0_i32, %c0_i32_0 : i32, i32
  }
  func.func @transform_5(%arg0: i32) -> (i32, i32) {
    %c0_i32 = arith.constant 0 : i32
    %c0_i32_0 = arith.constant 0 : i32
    return %arg0, %c0_i32 : i32, i32
  }
}

</mosaic_0001>

<bundles_post_ra>
// kernel: tpu_custom_call.1
= control target key start
LH: loop header
LB: loop body
LE: loop exit
PB: predicated region body
PF: predicated region fallthrough
CT: control target
= control target key end

     0   :  { %vm37_vm0 = vcmask 261120   ;;  %vm445_vm1 = vcmask 785408   ;;  %s900_s0 = inlined_call_operand.vmem [shape: f32[128,32], index: 0, kind: input, shape index: {}]   ;;  %s901_s3 = inlined_call_operand.vmem [shape: bf16[32,96], index: 3, kind: input, shape index: {}]   ;;  %s902_s1 = inlined_call_operand.vmem [shape: f32[1,32], index: 1, kind: input, shape index: {}]   ;;  %s903_s2 = inlined_call_operand.vmem [shape: f32[1,32], index: 2, kind: input, shape index: {}]   ;;  %s904_s4 = inlined_call_operand.vmem [shape: f32[1,96], index: 4, kind: input, shape index: {}]   ;;  %s905_s5 = inlined_call_operand.vmem [shape: f32[128,96], index: 5, kind: output, shape index: {}]  }
   0x1   :  { %v21_v0 = vld [vmem:[%s900_s0] sm:$0xff]  ;;  %v22_v2 = vld [vmem:[%s900_s0 + $0x8] sm:$0xff]  ;;  %v23_v8 = vld [vmem:[%s900_s0 + $0x10] sm:$0xff] }
   0x2   :  { %v29_v1 = vld [vmem:[%s900_s0 + $0x40] sm:$0xff]  ;;  %v38_v3 = vsel %vm37_vm0, %v21_v0, 0.0  ;;  %v30_v5 = vld [vmem:[%s900_s0 + $0x48] sm:$0xff]  ;;  %v41_v6 = vsel %vm37_vm0, %v22_v2, 0.0  ;;  %v24_v9 = vld [vmem:[%s900_s0 + $0x18] sm:$0xff]  ;;  %v44_v10 = vsel %vm37_vm0, %v23_v8, 0.0 }
   0x3   :  { %v62_v4 = vsel %vm37_vm0, %v29_v1, 0.0  ;;  %39 = vadd.xlane.f32.xlu0 %v38_v3  ;;  %v65_v7 = vsel %vm37_vm0, %v30_v5, 0.0  ;;  %v47_v11 = vsel %vm37_vm0, %v24_v9, 0.0  ;;  %v604_v12 = vld [vmem:[%s900_s0 + $0x50] sm:$0xff]  ;;  %v609_v13 = vld [vmem:[%s900_s0 + $0x58] sm:$0xff]  ;;  %v618_v16 = vld [vmem:[%s900_s0 + $0x20] sm:$0xff] }
   0x4   :  { %63 = vadd.xlane.f32.xlu1 %v62_v4  ;;  %v68_v14 = vsel %vm37_vm0, %v604_v12, 0.0  ;;  %v71_v15 = vsel %vm37_vm0, %v609_v13, 0.0  ;;  %v623_v17 = vld [vmem:[%s900_s0 + $0x28] sm:$0xff]  ;;  %v50_v18 = vsel %vm37_vm0, %v618_v16, 0.0  ;;  %v632_v20 = vld [vmem:[%s900_s0 + $0x60] sm:$0xff]  ;;  %v646_v24 = vld [vmem:[%s900_s0 + $0x30] sm:$0xff] }
   0x5   :  { %v53_v19 = vsel %vm37_vm0, %v623_v17, 0.0  ;;  %v637_v21 = vld [vmem:[%s900_s0 + $0x68] sm:$0xff]  ;;  %v74_v22 = vsel %vm37_vm0, %v632_v20, 0.0  ;;  %v651_v25 = vld [vmem:[%s900_s0 + $0x38] sm:$0xff]  ;;  %v56_v26 = vsel %vm37_vm0, %v646_v24, 0.0  ;;  %v660_v28 = vld [vmem:[%s900_s0 + $0x70] sm:$0xff] }
   0x6   :  { %v77_v23 = vsel %vm37_vm0, %v637_v21, 0.0  ;;  %v59_v27 = vsel %vm37_vm0, %v651_v25, 0.0  ;;  %v665_v29 = vld [vmem:[%s900_s0 + $0x78] sm:$0xff]  ;;  %v80_v30 = vsel %vm37_vm0, %v660_v28, 0.0 }
   0x7   :  { %42 = vadd.xlane.f32.xlu0 %v41_v6  ;;  %v83_v31 = vsel %vm37_vm0, %v665_v29, 0.0 }
   0x8   :  { %66 = vadd.xlane.f32.xlu1 %v65_v7 }
   0xb   :  { %45 = vadd.xlane.f32.xlu0 %v44_v10 }
   0xc   :  { %48 = vadd.xlane.f32.xlu1 %v47_v11 }
   0xf   :  { %69 = vadd.xlane.f32.xlu0 %v68_v14 }
  0x10   :  { %72 = vadd.xlane.f32.xlu1 %v71_v15 }
  0x13   :  { %51 = vadd.xlane.f32.xlu0 %v50_v18 }
  0x14   :  { %54 = vadd.xlane.f32.xlu1 %v53_v19 }
  0x17   :  { %75 = vadd.xlane.f32.xlu0 %v74_v22 }
  0x18   :  { %78 = vadd.xlane.f32.xlu1 %v77_v23 }
  0x1b   :  { %57 = vadd.xlane.f32.xlu0 %v56_v26 }
  0x1c   :  { %60 = vadd.xlane.f32.xlu1 %v59_v27 }
  0x1f   :  { %81 = vadd.xlane.f32.xlu0 %v80_v30 }
  0x20   :  { %84 = vadd.xlane.f32.xlu1 %v83_v31 }
  0x8c   :  { %v40_v32 = vpop.xlane.xlu0 %39 }
  0x8d   :  { %v64_v33 = vpop.xlane.xlu1 %63  ;;  %v87_v34 = vmul.f32 0.03125, %v40_v32 }
  0x8e   :  { %v95_v35 = vmul.f32 0.03125, %v64_v33 }
  0x8f   :  { %v671_v36 = vsub.f32 %v21_v0, %v87_v34 }
  0x90   :  { %v673_v37 = vsub.f32 %v29_v1, %v95_v35  ;;  %v43_v38 = vpop.xlane.xlu0 %42 }
  0x91   :  { %v67_v39 = vpop.xlane.xlu1 %66  ;;  %v88_v40 = vmul.f32 0.03125, %v43_v38  ;;  %v119_v42 = vmul.f32 %v671_v36, %v671_v36 }
  0x92   :  { %v96_v41 = vmul.f32 0.03125, %v67_v39  ;;  %v127_v43 = vmul.f32 %v673_v37, %v673_v37 }
  0x93   :  { %v679_v44 = vsub.f32 %v22_v2, %v88_v40  ;;  %v135_v46 = vsel %vm37_vm0, %v119_v42, 0.0 }
  0x94   :  { %v681_v45 = vsub.f32 %v30_v5, %v96_v41  ;;  %136 = vadd.xlane.f32.xlu0 %v135_v46  ;;  %v46_v47 = vpop.xlane.xlu0 %45  ;;  %v159_v49 = vsel %vm37_vm0, %v127_v43, 0.0 }
  0x95   :  { %v49_v48 = vpop.xlane.xlu1 %48  ;;  %v89_v50 = vmul.f32 0.03125, %v46_v47  ;;  %v120_v52 = vmul.f32 %v679_v44, %v679_v44 }
  0x96   :  { %v90_v51 = vmul.f32 0.03125, %v49_v48  ;;  %v128_v53 = vmul.f32 %v681_v45, %v681_v45 }
  0x97   :  { %v689_v54 = vsub.f32 %v23_v8, %v89_v50  ;;  %v138_v56 = vsel %vm37_vm0, %v120_v52, 0.0 }
  0x98   :  { %v691_v55 = vsub.f32 %v24_v9, %v90_v51  ;;  %160 = vadd.xlane.f32.xlu0 %v159_v49  ;;  %139 = vadd.xlane.f32.xlu1 %v138_v56  ;;  %v70_v57 = vpop.xlane.xlu0 %69  ;;  %v162_v59 = vsel %vm37_vm0, %v128_v53, 0.0  ;;  %v514_v53 = vld [vmem:[%s901_s3] sm:$0xff]  }
  0x99   :  { %v73_v58 = vpop.xlane.xlu1 %72  ;;  %v97_v60 = vmul.f32 0.03125, %v70_v57  ;;  %v121_v62 = vmul.f32 %v689_v54, %v689_v54 }
  0x9a   :  { %v98_v61 = vmul.f32 0.03125, %v73_v58  ;;  %v122_v63 = vmul.f32 %v691_v55, %v691_v55 }
  0x9b   :  { %v700_v0 = vsub.f32 %v604_v12, %v97_v60  ;;  %v141_v2 = vsel %vm37_vm0, %v121_v62, 0.0 }
  0x9c   :  { %v703_v1 = vsub.f32 %v609_v13, %v98_v61  ;;  %163 = vadd.xlane.f32.xlu1 %v162_v59  ;;  %142 = vadd.xlane.f32.xlu0 %v141_v2  ;;  %v52_v3 = vpop.xlane.xlu0 %51  ;;  %v144_v5 = vsel %vm37_vm0, %v122_v63, 0.0 }
  0x9d   :  { %v55_v4 = vpop.xlane.xlu1 %54  ;;  %v91_v6 = vmul.f32 0.03125, %v52_v3  ;;  %v129_v8 = vmul.f32 %v700_v0, %v700_v0 }
  0x9e   :  { %v92_v7 = vmul.f32 0.03125, %v55_v4  ;;  %v130_v9 = vmul.f32 %v703_v1, %v703_v1 }
  0x9f   :  { %v712_v10 = vsub.f32 %v618_v16, %v91_v6  ;;  %v165_v12 = vsel %vm37_vm0, %v129_v8, 0.0 }
  0xa0   :  { %v715_v11 = vsub.f32 %v623_v17, %v92_v7  ;;  %145 = vadd.xlane.f32.xlu1 %v144_v5  ;;  %166 = vadd.xlane.f32.xlu0 %v165_v12  ;;  %v76_v13 = vpop.xlane.xlu0 %75  ;;  %v168_v15 = vsel %vm37_vm0, %v130_v9, 0.0 }
  0xa1   :  { %v79_v14 = vpop.xlane.xlu1 %78  ;;  %v99_v18 = vmul.f32 0.03125, %v76_v13  ;;  %v123_v22 = vmul.f32 %v712_v10, %v712_v10 }
  0xa2   :  { %v100_v19 = vmul.f32 0.03125, %v79_v14  ;;  %v124_v16 = vmul.f32 %v715_v11, %v715_v11 }
  0xa3   :  { %v724_v23 = vsub.f32 %v632_v20, %v99_v18  ;;  %v147_v26 = vsel %vm37_vm0, %v123_v22, 0.0 }
  0xa4   :  { %v727_v17 = vsub.f32 %v637_v21, %v100_v19  ;;  %169 = vadd.xlane.f32.xlu1 %v168_v15  ;;  %148 = vadd.xlane.f32.xlu0 %v147_v26  ;;  %v58_v27 = vpop.xlane.xlu0 %57  ;;  %v150_v31 = vsel %vm37_vm0, %v124_v16, 0.0 }
  0xa5   :  { %v61_v30 = vpop.xlane.xlu1 %60  ;;  %v93_v32 = vmul.f32 0.03125, %v58_v27  ;;  %v131_v34 = vmul.f32 %v724_v23, %v724_v23 }
  0xa6   :  { %v94_v33 = vmul.f32 0.03125, %v61_v30  ;;  %v132_v20 = vmul.f32 %v727_v17, %v727_v17 }
  0xa7   :  { %v736_v35 = vsub.f32 %v646_v24, %v93_v32  ;;  %v171_v38 = vsel %vm37_vm0, %v131_v34, 0.0 }
  0xa8   :  { %v739_v21 = vsub.f32 %v651_v25, %v94_v33  ;;  %151 = vadd.xlane.f32.xlu1 %v150_v31  ;;  %172 = vadd.xlane.f32.xlu0 %v171_v38  ;;  %v82_v39 = vpop.xlane.xlu0 %81  ;;  %v174_v41 = vsel %vm37_vm0, %v132_v20, 0.0  ;;  %v771_v33 = vld [vmem:[%s902_s1] ss:$0 sm:$0xff] }
  0xa9   :  { %v85_v40 = vpop.xlane.xlu1 %84  ;;  %v101_v42 = vmul.f32 0.03125, %v82_v39  ;;  %v125_v46 = vmul.f32 %v736_v35, %v736_v35 }
  0xaa   :  { %v102_v43 = vmul.f32 0.03125, %v85_v40  ;;  %v126_v24 = vmul.f32 %v739_v21, %v739_v21 }
  0xab   :  { %v748_v47 = vsub.f32 %v660_v28, %v101_v42  ;;  %v153_v48 = vsel %vm37_vm0, %v125_v46, 0.0 }
  0xac   :  { %v751_v25 = vsub.f32 %v665_v29, %v102_v43  ;;  %175 = vadd.xlane.f32.xlu1 %v174_v41  ;;  %154 = vadd.xlane.f32.xlu0 %v153_v48  ;;  %v156_v49 = vsel %vm37_vm0, %v126_v24, 0.0  ;;  %v513_v29 = vld [vmem:[%s901_s3 + $0x8] sm:$0xff]  }
  0xad   :  { %v133_v50 = vmul.f32 %v748_v47, %v748_v47  ;;  %489 = vmatprep.subr.bf16.mxu0 %v513_v29  ;;  %509 = vmatprep.subr.bf16.mxu1 %v513_v29 }
  0xae   :  { %v134_v51 = vmul.f32 %v751_v25, %v751_v25  ;;  %490 = vmatpush3.bf16.msra.mxu0 %v513_v29  ;;  %511 = vmatpush3.bf16.msra.mxu1 %v513_v29 }
  0xaf   :  { %v177_v52 = vsel %vm37_vm0, %v133_v50, 0.0  ;;  %491 = vmatprep.subr.bf16.mxu0 %v514_v53  ;;  %510 = vmatprep.subr.bf16.mxu1 %v514_v53 }
  0xb0   :  { %157 = vadd.xlane.f32.xlu1 %v156_v49  ;;  %178 = vadd.xlane.f32.xlu0 %v177_v52  ;;  %v180_v28 = vsel %vm37_vm0, %v134_v51, 0.0 }
  0xb2   :  { %492 = vmatpush3.bf16.msra.mxu0 %v514_v53  ;;  %512 = vmatpush3.bf16.msra.mxu1 %v514_v53 }
  0xb4   :  { %181 = vadd.xlane.f32.xlu1 %v180_v28 }
 0x11d   :  { %v137_v56 = vpop.xlane.xlu0 %136 }
 0x11e   :  { %v183_v57 = vmul.f32 0.03125, %v137_v56 }
 0x120   :  { %v199_v58 = vadd.f32 1e-05, %v183_v57 }
 0x121   :  { %v140_v59 = vpop.xlane.xlu1 %139  ;;  %v161_v60 = vpop.xlane.xlu0 %160 }
 0x122   :  { %515 = vrsqrt.f32 %v199_v58  ;;  %v184_v61 = vmul.f32 0.03125, %v140_v59  ;;  %v191_v62 = vmul.f32 0.03125, %v161_v60 }
 0x124   :  { %v200_v63 = vadd.f32 1e-05, %v184_v61  ;;  %v207_v2 = vadd.f32 1e-05, %v191_v62 }
 0x125   :  { %v164_v3 = vpop.xlane.xlu1 %163  ;;  %v143_v4 = vpop.xlane.xlu0 %142 }
 0x126   :  { %517 = vrsqrt.f32 %v200_v63  ;;  %v192_v5 = vmul.f32 0.03125, %v164_v3  ;;  %v185_v6 = vmul.f32 0.03125, %v143_v4 }
 0x127   :  { %519 = vrsqrt.f32 %v207_v2 }
 0x128   :  { %v208_v7 = vadd.f32 1e-05, %v192_v5  ;;  %v201_v8 = vadd.f32 1e-05, %v185_v6 }
 0x129   :  { %v146_v9 = vpop.xlane.xlu1 %145  ;;  %v167_v12 = vpop.xlane.xlu0 %166 }
 0x12a   :  { %521 = vrsqrt.f32 %v208_v7  ;;  %v186_v13 = vmul.f32 0.03125, %v146_v9  ;;  %v193_v14 = vmul.f32 0.03125, %v167_v12 }
 0x12b   :  { %523 = vrsqrt.f32 %v201_v8 }
 0x12c   :  { %v202_v15 = vadd.f32 1e-05, %v186_v13  ;;  %v209_v18 = vadd.f32 1e-05, %v193_v14 }
 0x12d   :  { %v170_v19 = vpop.xlane.xlu1 %169  ;;  %v149_v22 = vpop.xlane.xlu0 %148 }
 0x12e   :  { %525 = vrsqrt.f32 %v202_v15  ;;  %v194_v16 = vmul.f32 0.03125, %v170_v19  ;;  %v187_v26 = vmul.f32 0.03125, %v149_v22 }
 0x12f   :  { %v516_v27 = vpop.eup %515  ;;  %527 = vrsqrt.f32 %v209_v18 }
 0x130   :  { %v210_v30 = vadd.f32 1e-05, %v194_v16  ;;  %v203_v31 = vadd.f32 1e-05, %v187_v26  ;;  %v231_v32 = vmul.f32 %v516_v27, %v671_v36  ;;  %v778_v36 = vld [vmem:[%s903_s2] ss:$0 sm:$0xff] }
 0x131   :  { %v152_v34 = vpop.xlane.xlu1 %151  ;;  %v173_v20 = vpop.xlane.xlu0 %172 }
 0x132   :  { %529 = vrsqrt.f32 %v210_v30  ;;  %v188_v38 = vmul.f32 0.03125, %v152_v34  ;;  %v195_v39 = vmul.f32 0.03125, %v173_v20  ;;  %v254_v41 = vmul.f32 %v771_v33, %v231_v32 }
 0x133   :  { %v518_v40 = vpop.eup %517  ;;  %531 = vrsqrt.f32 %v203_v31 }
 0x134   :  { %v520_v42 = vpop.eup %519  ;;  %v204_v43 = vadd.f32 1e-05, %v188_v38  ;;  %v211_v46 = vadd.f32 1e-05, %v195_v39  ;;  %v232_v24 = vmul.f32 %v518_v40, %v679_v44  ;;  %v277_v53 = vadd.f32 %v778_v36, %v254_v41 }
 0x135   :  { %v176_v48 = vpop.xlane.xlu1 %175  ;;  %v155_v49 = vpop.xlane.xlu0 %154  ;;  %v239_v50 = vmul.f32 %v520_v42, %v673_v37 }
 0x136   :  { %533 = vrsqrt.f32 %v204_v43  ;;  %v196_v51 = vmul.f32 0.03125, %v176_v48  ;;  %v189_v52 = vmul.f32 0.03125, %v155_v49  ;;  %v255_v28 = vmul.f32 %v771_v33, %v232_v24 }
 0x137   :  { %v522_v29 = vpop.eup %521  ;;  %535 = vrsqrt.f32 %v211_v46  ;;  %v262_v37 = vmul.f32 %v771_v33, %v239_v50 }
 0x138   :  { %v524_v56 = vpop.eup %523  ;;  %v212_v44 = vadd.f32 1e-05, %v196_v51  ;;  %v205_v57 = vadd.f32 1e-05, %v189_v52  ;;  %v278_v58 = vadd.f32 %v778_v36, %v255_v28  ;;  %v240_v59 = vmul.f32 %v522_v29, %v681_v45 }
 0x139   :  { %v158_v60 = vpop.xlane.xlu1 %157  ;;  %v179_v61 = vpop.xlane.xlu0 %178  ;;  %v233_v62 = vmul.f32 %v524_v56, %v689_v54  ;;  %v285_v54 = vadd.f32 %v778_v36, %v262_v37 }
 0x13a   :  { %537 = vrsqrt.f32 %v212_v44  ;;  %v190_v63 = vmul.f32 0.03125, %v158_v60  ;;  %v197_v2 = vmul.f32 0.03125, %v179_v61  ;;  %v293_v3 = vpack.c.bf16 %v278_v58, %v277_v53 }
 0x13b   :  { %v526_v4 = vpop.eup %525  ;;  %539 = vrsqrt.f32 %v205_v57  ;;  %v263_v5 = vmul.f32 %v771_v33, %v240_v59  ;;  %v256_v6 = vmul.f32 %v771_v33, %v233_v62 }
 0x13c   :  { %v528_v7 = vpop.eup %527  ;;  %v206_v8 = vadd.f32 1e-05, %v190_v63  ;;  %v213_v9 = vadd.f32 1e-05, %v197_v2  ;;  %493 = vmatprep.mubr.msk.bf16.mxu0 %vm37_vm0, %v293_v3  ;;  %v234_v45 = vmul.f32 %v526_v4, %v691_v55  ;;  %v468_v4 = vld [vmem:[%s904_s4] ss:$0 sm:$0xff] }
 0x13d   :  { %v182_v12 = vpop.xlane.xlu1 %181  ;;  %v286_v13 = vadd.f32 %v778_v36, %v263_v5  ;;  %v241_v14 = vmul.f32 %v528_v7, %v700_v0  ;;  %v279_v16 = vadd.f32 %v778_v36, %v256_v6 }
 0x13e   :  { %541 = vrsqrt.f32 %v206_v8  ;;  %v198_v15 = vmul.f32 0.03125, %v182_v12  ;;  %v257_v18 = vmul.f32 %v771_v33, %v234_v45 }
 0x13f   :  { %v530_v19 = vpop.eup %529  ;;  %543 = vrsqrt.f32 %v213_v9  ;;  %v297_v22 = vpack.c.bf16 %v286_v13, %v285_v54  ;;  %v264_v31 = vmul.f32 %v771_v33, %v241_v14 }
 0x140   :  { %v532_v26 = vpop.eup %531  ;;  %v214_v27 = vadd.f32 1e-05, %v198_v15  ;;  %v280_v55 = vadd.f32 %v778_v36, %v257_v18  ;;  %v242_v30 = vmul.f32 %v530_v19, %v703_v1 }
 0x141   :  { %501 = vmatprep.mubr.msk.bf16.mxu1 %vm37_vm0, %v297_v22  ;;  %v235_v0 = vmul.f32 %v532_v26, %v712_v10  ;;  %v287_v39 = vadd.f32 %v778_v36, %v264_v31 }
 0x142   :  { %545 = vrsqrt.f32 %v214_v27  ;;  %v294_v32 = vpack.c.bf16 %v280_v55, %v279_v16  ;;  %v265_v34 = vmul.f32 %v771_v33, %v242_v30 }
 0x143   :  { %v534_v20 = vpop.eup %533  ;;  %v258_v41 = vmul.f32 %v771_v33, %v235_v0 }
 0x144   :  { %v536_v38 = vpop.eup %535  ;;  %494 = vmatmul.mubr.msk.bf16.vlgmr.msra.gmra.mxu0 %vm37_vm0, %v294_v32  ;;  %v288_v40 = vadd.f32 %v778_v36, %v265_v34  ;;  %v236_v1 = vmul.f32 %v534_v20, %v715_v11 }
 0x145   :  { %v243_v42 = vmul.f32 %v536_v38, %v724_v23  ;;  %v281_v48 = vadd.f32 %v778_v36, %v258_v41 }
 0x146   :  { %v298_v43 = vpack.c.bf16 %v288_v40, %v287_v39  ;;  %v259_v10 = vmul.f32 %v771_v33, %v236_v1 }
 0x147   :  { %v538_v46 = vpop.eup %537  ;;  %v266_v51 = vmul.f32 %v771_v33, %v243_v42 }
 0x148   :  { %v540_v24 = vpop.eup %539  ;;  %502 = vmatmul.mubr.msk.bf16.vlgmr.msra.gmra.mxu1 %vm37_vm0, %v298_v43  ;;  %v282_v49 = vadd.f32 %v778_v36, %v259_v10  ;;  %v244_v50 = vmul.f32 %v538_v46, %v727_v17 }
 0x149   :  { %v237_v11 = vmul.f32 %v540_v24, %v736_v35  ;;  %v289_v53 = vadd.f32 %v778_v36, %v266_v51 }
 0x14a   :  { %v295_v52 = vpack.c.bf16 %v282_v49, %v281_v48  ;;  %v267_v23 = vmul.f32 %v771_v33, %v244_v50 }
 0x14b   :  { %v542_v28 = vpop.eup %541  ;;  %v260_v57 = vmul.f32 %v771_v33, %v237_v11 }
 0x14c   :  { %v544_v29 = vpop.eup %543  ;;  %497 = vmatprep.mubr.msk.bf16.mxu0 %vm37_vm0, %v295_v52  ;;  %v290_v56 = vadd.f32 %v778_v36, %v267_v23  ;;  %v238_v44 = vmul.f32 %v542_v28, %v739_v21 }
 0x14d   :  { %v245_v17 = vmul.f32 %v544_v29, %v748_v47  ;;  %v283_v60 = vadd.f32 %v778_v36, %v260_v57 }
 0x14e   :  { %v299_v58 = vpack.c.bf16 %v290_v56, %v289_v53  ;;  %v261_v35 = vmul.f32 %v771_v33, %v238_v44 }
 0x14f   :  { %v546_v59 = vpop.eup %545  ;;  %v268_v62 = vmul.f32 %v771_v33, %v245_v17 }
 0x150   :  { %505 = vmatprep.mubr.msk.bf16.mxu1 %vm37_vm0, %v299_v58  ;;  %v284_v61 = vadd.f32 %v778_v36, %v261_v35  ;;  %v246_v37 = vmul.f32 %v546_v59, %v751_v25 }
 0x151   :  { %v291_v47 = vadd.f32 %v778_v36, %v268_v62 }
 0x152   :  { %v296_v63 = vpack.c.bf16 %v284_v61, %v283_v60  ;;  %v269_v21 = vmul.f32 %v771_v33, %v246_v37 }
 0x154   :  { %498 = vmatmul.mubr.msk.bf16.gmra.mxu0 %vm37_vm0, %v296_v63  ;;  %v292_v2 = vadd.f32 %v778_v36, %v269_v21 }
 0x156   :  { %v300_v3 = vpack.c.bf16 %v292_v2, %v291_v47 }
 0x158   :  { %506 = vmatmul.mubr.msk.bf16.gmra.mxu1 %vm37_vm0, %v300_v3 }
 0x204   :  { %v495_v5 = vpop.f32.mrf.mxu0 }
 0x205   :  { %v391_v25 = vadd.f32 %v495_v5, %v468_v4 }
 0x206   :  { %v382_v6 = vpop.f32.mrf.mxu0 }
 0x207   :  { %448 = vst.msk [vmem:[%s905_s5 + $0x10] sm:$0xff] %vm445_vm1, %v391_v25  ;;  %v383_v33 = vadd.f32 %v468_v4, %v382_v6 }
 0x208   :  { %v496_v7 = vpop.f32.mrf.mxu0  ;;  %v503_v8 = vpop.f32.mrf.mxu1 }
 0x209   :  { %446 = vst.msk [vmem:[%s905_s5] sm:$0xff] %vm445_vm1, %v383_v33  ;;  %v394_v36 = vadd.f32 %v496_v7, %v468_v4  ;;  %v423_v9 = vadd.f32 %v503_v8, %v468_v4 }
 0x20a   :  { %v385_v45 = vpop.f32.mrf.mxu0  ;;  %v414_v12 = vpop.f32.mrf.mxu1 }
 0x20b   :  { %449 = vst.msk [vmem:[%s905_s5 + $0x18] sm:$0xff] %vm445_vm1, %v394_v36  ;;  %456 = vst.msk [vmem:[%s905_s5 + $0x50] sm:$0xff] %vm445_vm1, %v423_v9  ;;  %v386_v54 = vadd.f32 %v468_v4, %v385_v45  ;;  %v415_v13 = vadd.f32 %v468_v4, %v414_v12 }
 0x20c   :  { %v504_v14 = vpop.f32.mrf.mxu1 }
 0x20d   :  { %447 = vst.msk [vmem:[%s905_s5 + $0x8] sm:$0xff] %vm445_vm1, %v386_v54  ;;  %454 = vst.msk [vmem:[%s905_s5 + $0x40] sm:$0xff] %vm445_vm1, %v415_v13  ;;  %v426_v15 = vadd.f32 %v504_v14, %v468_v4 }
 0x20e   :  { %v417_v18 = vpop.f32.mrf.mxu1 }
 0x20f   :  { %457 = vst.msk [vmem:[%s905_s5 + $0x58] sm:$0xff] %vm445_vm1, %v426_v15  ;;  %v418_v19 = vadd.f32 %v468_v4, %v417_v18 }
 0x211   :  { %455 = vst.msk [vmem:[%s905_s5 + $0x48] sm:$0xff] %vm445_vm1, %v418_v19 }
 0x214   :  { %v499_v22 = vpop.f32.mrf.mxu0 }
 0x215   :  { %v407_v16 = vadd.f32 %v499_v22, %v468_v4 }
 0x216   :  { %v398_v26 = vpop.f32.mrf.mxu0 }
 0x217   :  { %452 = vst.msk [vmem:[%s905_s5 + $0x30] sm:$0xff] %vm445_vm1, %v407_v16  ;;  %v399_v27 = vadd.f32 %v468_v4, %v398_v26 }
 0x218   :  { %v500_v55 = vpop.f32.mrf.mxu0  ;;  %v507_v30 = vpop.f32.mrf.mxu1 }
 0x219   :  { %450 = vst.msk [vmem:[%s905_s5 + $0x20] sm:$0xff] %vm445_vm1, %v399_v27  ;;  %v410_v31 = vadd.f32 %v500_v55, %v468_v4  ;;  %v439_v0 = vadd.f32 %v507_v30, %v468_v4 }
 0x21a   :  { %v401_v32 = vpop.f32.mrf.mxu0  ;;  %v430_v34 = vpop.f32.mrf.mxu1 }
 0x21b   :  { %453 = vst.msk [vmem:[%s905_s5 + $0x38] sm:$0xff] %vm445_vm1, %v410_v31  ;;  %460 = vst.msk [vmem:[%s905_s5 + $0x70] sm:$0xff] %vm445_vm1, %v439_v0  ;;  %v402_v20 = vadd.f32 %v468_v4, %v401_v32  ;;  %v431_v38 = vadd.f32 %v468_v4, %v430_v34 }
 0x21c   :  { %v508_v39 = vpop.f32.mrf.mxu1 }
 0x21d   :  { %451 = vst.msk [vmem:[%s905_s5 + $0x28] sm:$0xff] %vm445_vm1, %v402_v20  ;;  %458 = vst.msk [vmem:[%s905_s5 + $0x60] sm:$0xff] %vm445_vm1, %v431_v38  ;;  %v442_v40 = vadd.f32 %v508_v39, %v468_v4 }
 0x21e   :  { %v433_v1 = vpop.f32.mrf.mxu1 }
 0x21f   :  { %461 = vst.msk [vmem:[%s905_s5 + $0x78] sm:$0xff] %vm445_vm1, %v442_v40  ;;  %v434_v41 = vadd.f32 %v468_v4, %v433_v1 }
 0x221   :  { %459 = vst.msk [vmem:[%s905_s5 + $0x68] sm:$0xff] %vm445_vm1, %v434_v41 }

</bundles_post_ra>
